<compile_context>
chip_gen: v6e
topology: v6e:2x2x1
jax: 0.10.0
libtpu: 0.0.40
codegen_flags: <defaults>
</compile_context>

<pallas_src>
import functools

import jax
import jax.numpy as jnp
from jax import lax
from jax.experimental import pallas as pl
from jax.experimental.pallas import tpu as pltpu

_LANES = 128
_CHUNK_ROWS = 128      # in-kernel compute granularity: 16,384 boxes per chunk
_MAX_TILE_ROWS = 512   # per-grid-step DMA granularity: 65,536 boxes (~2.25 MiB)


def _round_up(x, m):
    return ((x + m - 1) // m) * m


def _iou_loss_kernel(p_ref, t_ref, *rest, loss_type, n, tile_rows, chunk_rows,
                     has_weight):
    if has_weight:
        w_ref, out_ref = rest
    else:
        w_ref = None
        (out_ref,) = rest

    n_out = 5 if has_weight else 3
    step = pl.program_id(0)
    n_chunks = tile_rows // chunk_rows
    groups = chunk_rows // 8

    # Loop-invariant index planes for the ragged-tail mask.
    row_ids = lax.broadcasted_iota(jnp.int32, (chunk_rows, _LANES), 0)
    lane_ids = lax.broadcasted_iota(jnp.int32, (chunk_rows, _LANES), 1)

    def reduce8(x):
        # (chunk_rows, 128) -> (8, 128); vreg-aligned reshape + pure VPU adds.
        return x.reshape(groups, 8, _LANES).sum(axis=0)

    def chunk_body(c, accs):
        off = pl.multiple_of(c * chunk_rows, chunk_rows)
        rows_sl = pl.ds(off, chunk_rows)

        px1 = p_ref[0, rows_sl, :]
        py1 = p_ref[1, rows_sl, :]
        px2 = p_ref[2, rows_sl, :]
        py2 = p_ref[3, rows_sl, :]
        tx1 = t_ref[0, rows_sl, :]
        ty1 = t_ref[1, rows_sl, :]
        tx2 = t_ref[2, rows_sl, :]
        ty2 = t_ref[3, rows_sl, :]

        # Separate areas.
        target_area = (tx2 - tx1) * (ty2 - ty1)
        pred_area = (px2 - px1) * (py2 - py1)

        # Intersection / IoU.
        w_inter = jnp.maximum(jnp.minimum(px2, tx2) - jnp.maximum(px1, tx1), 0.0)
        h_inter = jnp.maximum(jnp.minimum(py2, ty2) - jnp.maximum(py1, ty1), 0.0)
        area_inter = w_inter * h_inter
        area_union = target_area + pred_area - area_inter
        ious = (area_inter + 1.0) / (area_union + 1.0)

        # Enclosing box / GIoU term.
        w_c = jnp.maximum(px2, tx2) - jnp.minimum(px1, tx1)
        h_c = jnp.maximum(py2, ty2) - jnp.minimum(py1, ty1)
        ac_union = w_c * h_c + 1e-07
        extra_term = (ac_union - area_union) / ac_union

        if loss_type == 'iou':
            losses = -jnp.log(ious)
        elif loss_type == 'linear_iou':
            losses = 1.0 - ious
        elif loss_type == 'giou':
            losses = 1.0 - (ious - extra_term)
        else:
            raise NotImplementedError(loss_type)

        # Validity mask for the zero-padded ragged tail (padding only, never
        # garbage: the wrapper pads the arrays to a whole number of tiles).
        box_idx = (step * tile_rows + off + row_ids) * _LANES + lane_ids
        valid = box_idx < n

        l_m = jnp.where(valid, losses, 0.0)
        i_m = jnp.where(valid, ious, 0.0)
        e_m = jnp.where(valid, extra_term, 0.0)

        if has_weight:
            w_v = w_ref[rows_sl, :]
            w_m = jnp.where(valid, w_v, 0.0)
            parts = (l_m * w_m, l_m, i_m, e_m, w_m)
        else:
            parts = (l_m, i_m, e_m)

        return tuple(a + reduce8(q) for a, q in zip(accs, parts))

    init = tuple(jnp.zeros((8, _LANES), jnp.float32) for _ in range(n_out))
    accs = lax.fori_loop(0, n_chunks, chunk_body, init)

    for k in range(n_out):
        out_ref[0, k] = accs[k]


@functools.partial(jax.jit, static_argnames=("loss_type",))
def _iou_loss_sums(pred, target, weight, loss_type):
    """All staging (cast/transpose/pad/reshape) + pallas_call under one jit."""
    n = pred.shape[0]
    has_weight = weight is not None
    n_out = 5 if has_weight else 3

    rows = pl.cdiv(n, _LANES)
    if rows <= _CHUNK_ROWS:
        tile_rows = _round_up(rows, 8)
        chunk_rows = tile_rows
    else:
        tile_rows = min(_MAX_TILE_ROWS, _round_up(rows, _CHUNK_ROWS))
        chunk_rows = _CHUNK_ROWS
    rows_pad = _round_up(rows, tile_rows)
    steps = rows_pad // tile_rows
    n_pad = rows_pad * _LANES

    def _planar(x):
        # (n, 4) -> (4, rows_pad, 128); one fused transpose+pad copy per array.
        x = x.astype(jnp.float32).T
        if n_pad != n:
            x = jnp.pad(x, ((0, 0), (0, n_pad - n)))
        return x.reshape(4, rows_pad, _LANES)

    p2 = _planar(pred)
    t2 = _planar(target)

    inputs = [p2, t2]
    in_specs = [pl.BlockSpec((4, tile_rows, _LANES), lambda i: (0, i, 0)),
                pl.BlockSpec((4, tile_rows, _LANES), lambda i: (0, i, 0))]
    if has_weight:
        w = weight.astype(jnp.float32).reshape(-1)
        if n_pad != n:
            w = jnp.pad(w, (0, n_pad - n))
        inputs.append(w.reshape(rows_pad, _LANES))
        in_specs.append(pl.BlockSpec((tile_rows, _LANES), lambda i: (i, 0)))

    kernel = functools.partial(
        _iou_loss_kernel, loss_type=loss_type, n=n,
        tile_rows=tile_rows, chunk_rows=chunk_rows, has_weight=has_weight)

    # Each grid step writes its own lane-dense partial-sum block -> the grid
    # axis is independent ("parallel": v7x megacore shards it across cores).
    partials = pl.pallas_call(
        kernel,
        out_shape=jax.ShapeDtypeStruct((steps, n_out, 8, _LANES), jnp.float32),
        grid_spec=pltpu.PrefetchScalarGridSpec(
            num_scalar_prefetch=0,
            grid=(steps,),
            in_specs=in_specs,
            out_specs=pl.BlockSpec((1, n_out, 8, _LANES),
                                   lambda i: (i, 0, 0, 0)),
        ),
        compiler_params=pltpu.CompilerParams(
            dimension_semantics=("parallel",)),
    )(*inputs)

    return jnp.sum(partials, axis=(0, 2, 3))


class IOULoss:
    """Pallas TPU port of ltr.models.loss.iou_loss.IOULoss (forward only)."""

    def __init__(self, loss_type='iou'):
        self.loss_type = loss_type

    def __call__(self, pred, target, weight=None):
        assert pred.shape[0] != 0

        if weight is None:
            s = _iou_loss_sums(pred, target, None, loss_type=self.loss_type)
            return s[0], s[1], s[2]

        s = _iou_loss_sums(pred, target, weight, loss_type=self.loss_type)
        # TODO(synk): the original module picks scalar-vs-tuple return based on
        # the runtime value of weight.sum(); that structural branch cannot live
        # on device, so this is one blocking readback of an already-computed
        # (5,) result from the SAME kernel launch (no extra reduction kernel).
        if float(s[4]) > 0:
            return s[0]
        return s[1], s[2], s[3]


def _reference(pred, target, weight, loss_type):
    # Pure-JAX reference mirroring the PyTorch module.
    px1, py1, px2, py2 = pred[:, 0], pred[:, 1], pred[:, 2], pred[:, 3]
    tx1, ty1, tx2, ty2 = target[:, 0], target[:, 1], target[:, 2], target[:, 3]
    target_area = (tx2 - tx1) * (ty2 - ty1)
    pred_area = (px2 - px1) * (py2 - py1)
    w_i = jnp.clip(jnp.minimum(px2, tx2) - jnp.maximum(px1, tx1), 0)
    h_i = jnp.clip(jnp.minimum(py2, ty2) - jnp.maximum(py1, ty1), 0)
    inter = w_i * h_i
    union = target_area + pred_area - inter
    ious = (inter + 1.0) / (union + 1.0)
    wc = jnp.maximum(px2, tx2) - jnp.minimum(px1, tx1)
    hc = jnp.maximum(py2, ty2) - jnp.minimum(py1, ty1)
    ac = wc * hc + 1e-07
    extra = (ac - union) / ac
    gious = ious - extra
    if loss_type == 'iou':
        losses = -jnp.log(ious)
    elif loss_type == 'linear_iou':
        losses = 1 - ious
    else:
        losses = 1 - gious
    if weight is not None and jnp.sum(weight) > 0:
        return (losses * weight).sum()
    return losses.sum(), ious.sum(), extra.sum()


def _close(a, b, rtol=1e-3, atol=1e-3):
    a = float(a)
    b = float(b)
    return abs(a - b) <= atol + rtol * abs(b)


def _make_boxes(key, n):
    k1, k2, k3, k4, k5 = jax.random.split(key, 5)
    p_xy = jax.random.uniform(k1, (n, 2), minval=0.0, maxval=5.0)
    p_wh = jax.random.uniform(k2, (n, 2), minval=1.0, maxval=4.0)
    pred = jnp.concatenate([p_xy, p_xy + p_wh], axis=1)
    t_xy = jax.random.uniform(k3, (n, 2), minval=0.0, maxval=5.0)
    t_wh = jax.random.uniform(k4, (n, 2), minval=1.0, maxval=4.0)
    target = jnp.concatenate([t_xy, t_xy + t_wh], axis=1)
    weight = jax.random.uniform(k5, (n,), minval=0.1, maxval=1.0)
    return pred, target, weight


if __name__ == "__main__":
    key = jax.random.PRNGKey(0)
    key_small, key_big = jax.random.split(key)

    # --- small case: N = 8 boxes (x1, y1, x2, y2) ---
    N = 8
    pred, target, weight = _make_boxes(key_small, N)

    loss_fn = IOULoss(loss_type='iou')

    # branch 1: no weight -> (losses.sum(), ious.sum(), extra_term.sum())
    out_tuple = jax.block_until_ready(loss_fn(pred, target))
    ref_tuple = _reference(pred, target, None, 'iou')
    for a, b in zip(out_tuple, ref_tuple):
        assert _close(a, b), (float(a), float(b))

    # branch 2: with weight -> (losses * weight).sum()
    out_w = jax.block_until_ready(loss_fn(pred, target, weight))
    ref_w = _reference(pred, target, weight, 'iou')
    assert _close(out_w, ref_w), (float(out_w), float(ref_w))

    # giou variant, unweighted
    giou_fn = IOULoss(loss_type='giou')
    out_g = jax.block_until_ready(giou_fn(pred, target))
    ref_g = _reference(pred, target, None, 'giou')
    for a, b in zip(out_g, ref_g):
        assert _close(a, b), (float(a), float(b))

    # linear_iou variant, weighted
    lin_fn = IOULoss(loss_type='linear_iou')
    out_l = jax.block_until_ready(lin_fn(pred, target, weight))
    ref_l = _reference(pred, target, weight, 'linear_iou')
    assert _close(out_l, ref_l), (float(out_l), float(ref_l))

    # --- larger case: multi-step parallel grid (2 tiles x 4 chunks) + ragged tail ---
    N_big = 70000
    pred_b, target_b, weight_b = _make_boxes(key_big, N_big)

    out_big_w = jax.block_until_ready(loss_fn(pred_b, target_b, weight_b))
    ref_big_w = _reference(pred_b, target_b, weight_b, 'iou')
    assert _close(out_big_w, ref_big_w), (float(out_big_w), float(ref_big_w))

    out_big = jax.block_until_ready(loss_fn(pred_b, target_b))
    ref_big = _reference(pred_b, target_b, None, 'iou')
    for a, b in zip(out_big, ref_big):
        assert _close(a, b), (float(a), float(b))

    print("KERNEL_OK")
</pallas_src>

<mosaic_0001>
module attributes {stable_mosaic.version = 11 : i64} {
  func.func @_iou_loss_kernel(%arg0: i32, %arg1: memref<4x8x128xf32, #tpu.memory_space<vmem>>, %arg2: memref<4x8x128xf32, #tpu.memory_space<vmem>>, %arg3: memref<1x3x8x128xf32, #tpu.memory_space<vmem>>) attributes {dimension_semantics = [#tpu.dimension_semantics<parallel>], iteration_bounds = array<i64: 1>, scalar_prefetch = 0 : i64, scratch_operands = 0 : i64, tpu.core_type = #tpu.core_type<tc>, window_params = [{transform_indices = @transform_0, window_bounds = array<i64: 4, 8, 128>}, {transform_indices = @transform_1, window_bounds = array<i64: 4, 8, 128>}, {transform_indices = @transform_2, window_bounds = array<i64: 1, 3, 8, 128>}]} {
    %0 = tpu.iota {dimensions = array<i32: 0>} : vector<8x128xi32>
    %1 = tpu.iota {dimensions = array<i32: 1>} : vector<8x128xi32>
    %cst = arith.constant 0.000000e+00 : f32
    %2 = vector.broadcast %cst : f32 to vector<8x128xf32>
    %cst_0 = arith.constant 0.000000e+00 : f32
    %3 = vector.broadcast %cst_0 : f32 to vector<8x128xf32>
    %cst_1 = arith.constant 0.000000e+00 : f32
    %4 = vector.broadcast %cst_1 : f32 to vector<8x128xf32>
    %c0_i32 = arith.constant 0 : i32
    %c8_i32 = arith.constant 8 : i32
    %5 = arith.muli %c0_i32, %c8_i32 : i32
    %6 = tpu.assume_multiple %5, 8 : i32
    %c0 = arith.constant 0 : index
    %7 = arith.index_cast %6 : i32 to index
    %c0_2 = arith.constant 0 : index
    %8 = vector.load %arg1[%c0, %7, %c0_2] : memref<4x8x128xf32, #tpu.memory_space<vmem>>, vector<1x8x128xf32>
    %9 = vector.shape_cast %8 : vector<1x8x128xf32> to vector<8x128xf32>
    %c1 = arith.constant 1 : index
    %10 = arith.index_cast %6 : i32 to index
    %c0_3 = arith.constant 0 : index
    %11 = vector.load %arg1[%c1, %10, %c0_3] : memref<4x8x128xf32, #tpu.memory_space<vmem>>, vector<1x8x128xf32>
    %12 = vector.shape_cast %11 : vector<1x8x128xf32> to vector<8x128xf32>
    %c2 = arith.constant 2 : index
    %13 = arith.index_cast %6 : i32 to index
    %c0_4 = arith.constant 0 : index
    %14 = vector.load %arg1[%c2, %13, %c0_4] : memref<4x8x128xf32, #tpu.memory_space<vmem>>, vector<1x8x128xf32>
    %15 = vector.shape_cast %14 : vector<1x8x128xf32> to vector<8x128xf32>
    %c3 = arith.constant 3 : index
    %16 = arith.index_cast %6 : i32 to index
    %c0_5 = arith.constant 0 : index
    %17 = vector.load %arg1[%c3, %16, %c0_5] : memref<4x8x128xf32, #tpu.memory_space<vmem>>, vector<1x8x128xf32>
    %18 = vector.shape_cast %17 : vector<1x8x128xf32> to vector<8x128xf32>
    %c0_6 = arith.constant 0 : index
    %19 = arith.index_cast %6 : i32 to index
    %c0_7 = arith.constant 0 : index
    %20 = vector.load %arg2[%c0_6, %19, %c0_7] : memref<4x8x128xf32, #tpu.memory_space<vmem>>, vector<1x8x128xf32>
    %21 = vector.shape_cast %20 : vector<1x8x128xf32> to vector<8x128xf32>
    %c1_8 = arith.constant 1 : index
    %22 = arith.index_cast %6 : i32 to index
    %c0_9 = arith.constant 0 : index
    %23 = vector.load %arg2[%c1_8, %22, %c0_9] : memref<4x8x128xf32, #tpu.memory_space<vmem>>, vector<1x8x128xf32>
    %24 = vector.shape_cast %23 : vector<1x8x128xf32> to vector<8x128xf32>
    %c2_10 = arith.constant 2 : index
    %25 = arith.index_cast %6 : i32 to index
    %c0_11 = arith.constant 0 : index
    %26 = vector.load %arg2[%c2_10, %25, %c0_11] : memref<4x8x128xf32, #tpu.memory_space<vmem>>, vector<1x8x128xf32>
    %27 = vector.shape_cast %26 : vector<1x8x128xf32> to vector<8x128xf32>
    %c3_12 = arith.constant 3 : index
    %28 = arith.index_cast %6 : i32 to index
    %c0_13 = arith.constant 0 : index
    %29 = vector.load %arg2[%c3_12, %28, %c0_13] : memref<4x8x128xf32, #tpu.memory_space<vmem>>, vector<1x8x128xf32>
    %30 = vector.shape_cast %29 : vector<1x8x128xf32> to vector<8x128xf32>
    %31 = arith.subf %27, %21 : vector<8x128xf32>
    %32 = arith.subf %30, %24 : vector<8x128xf32>
    %33 = arith.mulf %31, %32 : vector<8x128xf32>
    %34 = arith.subf %15, %9 : vector<8x128xf32>
    %35 = arith.subf %18, %12 : vector<8x128xf32>
    %36 = arith.mulf %34, %35 : vector<8x128xf32>
    %37 = arith.minimumf %15, %27 : vector<8x128xf32>
    %38 = arith.maximumf %9, %21 : vector<8x128xf32>
    %39 = arith.subf %37, %38 : vector<8x128xf32>
    %cst_14 = arith.constant 0.000000e+00 : f32
    %40 = vector.broadcast %cst_14 : f32 to vector<8x128xf32>
    %41 = arith.maximumf %39, %40 : vector<8x128xf32>
    %42 = arith.minimumf %18, %30 : vector<8x128xf32>
    %43 = arith.maximumf %12, %24 : vector<8x128xf32>
    %44 = arith.subf %42, %43 : vector<8x128xf32>
    %cst_15 = arith.constant 0.000000e+00 : f32
    %45 = vector.broadcast %cst_15 : f32 to vector<8x128xf32>
    %46 = arith.maximumf %44, %45 : vector<8x128xf32>
    %47 = arith.mulf %41, %46 : vector<8x128xf32>
    %48 = arith.addf %33, %36 : vector<8x128xf32>
    %49 = arith.subf %48, %47 : vector<8x128xf32>
    %cst_16 = arith.constant 1.000000e+00 : f32
    %50 = vector.broadcast %cst_16 : f32 to vector<8x128xf32>
    %51 = arith.addf %47, %50 : vector<8x128xf32>
    %cst_17 = arith.constant 1.000000e+00 : f32
    %52 = vector.broadcast %cst_17 : f32 to vector<8x128xf32>
    %53 = arith.addf %49, %52 : vector<8x128xf32>
    %54 = arith.divf %51, %53 : vector<8x128xf32>
    %55 = arith.maximumf %15, %27 : vector<8x128xf32>
    %56 = arith.minimumf %9, %21 : vector<8x128xf32>
    %57 = arith.subf %55, %56 : vector<8x128xf32>
    %58 = arith.maximumf %18, %30 : vector<8x128xf32>
    %59 = arith.minimumf %12, %24 : vector<8x128xf32>
    %60 = arith.subf %58, %59 : vector<8x128xf32>
    %61 = arith.mulf %57, %60 : vector<8x128xf32>
    %cst_18 = arith.constant 1.000000e-07 : f32
    %62 = vector.broadcast %cst_18 : f32 to vector<8x128xf32>
    %63 = arith.addf %61, %62 : vector<8x128xf32>
    %64 = arith.subf %63, %49 : vector<8x128xf32>
    %65 = arith.divf %64, %63 : vector<8x128xf32>
    %66 = math.log %54 : vector<8x128xf32>
    %cst_19 = arith.constant 0.000000e+00 : f32
    %67 = vector.broadcast %cst_19 : f32 to vector<8x128xf32>
    %68 = arith.subf %67, %66 : vector<8x128xf32>
    %c8_i32_20 = arith.constant 8 : i32
    %69 = arith.muli %arg0, %c8_i32_20 : i32
    %70 = arith.addi %69, %6 : i32
    %71 = vector.broadcast %70 : i32 to vector<8x128xi32>
    %72 = arith.addi %71, %0 : vector<8x128xi32>
    %c128_i32 = arith.constant 128 : i32
    %73 = vector.broadcast %c128_i32 : i32 to vector<8x128xi32>
    %74 = arith.muli %72, %73 : vector<8x128xi32>
    %75 = arith.addi %74, %1 : vector<8x128xi32>
    %c8_i32_21 = arith.constant 8 : i32
    %76 = vector.broadcast %c8_i32_21 : i32 to vector<8x128xi32>
    %77 = arith.cmpi slt, %75, %76 : vector<8x128xi32>
    %cst_22 = arith.constant 0.000000e+00 : f32
    %78 = vector.broadcast %cst_22 : f32 to vector<8x128xf32>
    %79 = arith.select %77, %68, %78 : vector<8x128xi1>, vector<8x128xf32>
    %cst_23 = arith.constant 0.000000e+00 : f32
    %80 = vector.broadcast %cst_23 : f32 to vector<8x128xf32>
    %81 = arith.select %77, %54, %80 : vector<8x128xi1>, vector<8x128xf32>
    %cst_24 = arith.constant 0.000000e+00 : f32
    %82 = vector.broadcast %cst_24 : f32 to vector<8x128xf32>
    %83 = arith.select %77, %65, %82 : vector<8x128xi1>, vector<8x128xf32>
    %84 = vector.shape_cast %79 : vector<8x128xf32> to vector<1x8x128xf32>
    %cst_25 = arith.constant dense<0.000000e+00> : vector<8x128xf32>
    %85 = vector.multi_reduction <add>, %84, %cst_25 [0] : vector<1x8x128xf32> to vector<8x128xf32>
    %86 = arith.addf %2, %85 : vector<8x128xf32>
    %87 = vector.shape_cast %81 : vector<8x128xf32> to vector<1x8x128xf32>
    %cst_26 = arith.constant dense<0.000000e+00> : vector<8x128xf32>
    %88 = vector.multi_reduction <add>, %87, %cst_26 [0] : vector<1x8x128xf32> to vector<8x128xf32>
    %89 = arith.addf %3, %88 : vector<8x128xf32>
    %90 = vector.shape_cast %83 : vector<8x128xf32> to vector<1x8x128xf32>
    %cst_27 = arith.constant dense<0.000000e+00> : vector<8x128xf32>
    %91 = vector.multi_reduction <add>, %90, %cst_27 [0] : vector<1x8x128xf32> to vector<8x128xf32>
    %92 = arith.addf %4, %91 : vector<8x128xf32>
    %c1_i32 = arith.constant 1 : i32
    %c0_28 = arith.constant 0 : index
    %c0_29 = arith.constant 0 : index
    %c0_30 = arith.constant 0 : index
    %c0_31 = arith.constant 0 : index
    %93 = vector.load %arg3[%c0_28, %c0_29, %c0_30, %c0_31] : memref<1x3x8x128xf32, #tpu.memory_space<vmem>>, vector<1x1x8x128xf32>
    %94 = vector.shape_cast %93 : vector<1x1x8x128xf32> to vector<8x128xf32>
    %95 = vector.shape_cast %86 : vector<8x128xf32> to vector<1x1x8x128xf32>
    tpu.vector_store %arg3[%c0_28, %c0_29, %c0_30, %c0_31], %95 {strides = array<i32>} : memref<1x3x8x128xf32, #tpu.memory_space<vmem>>, vector<1x1x8x128xf32>,
    %c0_32 = arith.constant 0 : index
    %c1_33 = arith.constant 1 : index
    %c0_34 = arith.constant 0 : index
    %c0_35 = arith.constant 0 : index
    %96 = vector.load %arg3[%c0_32, %c1_33, %c0_34, %c0_35] : memref<1x3x8x128xf32, #tpu.memory_space<vmem>>, vector<1x1x8x128xf32>
    %97 = vector.shape_cast %96 : vector<1x1x8x128xf32> to vector<8x128xf32>
    %98 = vector.shape_cast %89 : vector<8x128xf32> to vector<1x1x8x128xf32>
    tpu.vector_store %arg3[%c0_32, %c1_33, %c0_34, %c0_35], %98 {strides = array<i32>} : memref<1x3x8x128xf32, #tpu.memory_space<vmem>>, vector<1x1x8x128xf32>,
    %c0_36 = arith.constant 0 : index
    %c2_37 = arith.constant 2 : index
    %c0_38 = arith.constant 0 : index
    %c0_39 = arith.constant 0 : index
    %99 = vector.load %arg3[%c0_36, %c2_37, %c0_38, %c0_39] : memref<1x3x8x128xf32, #tpu.memory_space<vmem>>, vector<1x1x8x128xf32>
    %100 = vector.shape_cast %99 : vector<1x1x8x128xf32> to vector<8x128xf32>
    %101 = vector.shape_cast %92 : vector<8x128xf32> to vector<1x1x8x128xf32>
    tpu.vector_store %arg3[%c0_36, %c2_37, %c0_38, %c0_39], %101 {strides = array<i32>} : memref<1x3x8x128xf32, #tpu.memory_space<vmem>>, vector<1x1x8x128xf32>,
    return
  }
  func.func @transform_0(%arg0: i32) -> (i32, i32, i32) {
    %c0_i32 = arith.constant 0 : i32
    %c0_i32_0 = arith.constant 0 : i32
    %c0_i32_1 = arith.constant 0 : i32
    return %c0_i32, %arg0, %c0_i32_0 : i32, i32, i32
  }
  func.func @transform_1(%arg0: i32) -> (i32, i32, i32) {
    %c0_i32 = arith.constant 0 : i32
    %c0_i32_0 = arith.constant 0 : i32
    %c0_i32_1 = arith.constant 0 : i32
    return %c0_i32, %arg0, %c0_i32_0 : i32, i32, i32
  }
  func.func @transform_2(%arg0: i32) -> (i32, i32, i32, i32) {
    %c0_i32 = arith.constant 0 : i32
    %c0_i32_0 = arith.constant 0 : i32
    %c0_i32_1 = arith.constant 0 : i32
    %c0_i32_2 = arith.constant 0 : i32
    return %arg0, %c0_i32, %c0_i32_0, %c0_i32_1 : i32, i32, i32, i32
  }
}

</mosaic_0001>

<bundles_post_ra>
// kernel: _iou_loss_sums.1
= control target key start
LH: loop header
LB: loop body
LE: loop exit
PB: predicated region body
PF: predicated region fallthrough
CT: control target
= control target key end

     0   :  { %v11_v31 = vlaneseq  ;;  %s160_s0 = inlined_call_operand.vmem [shape: f32[4,8,128], index: 0, kind: input, shape index: {}]   ;;  %s161_s1 = inlined_call_operand.vmem [shape: f32[4,8,128], index: 1, kind: input, shape index: {}]   ;;  %s162_s2 = inlined_call_operand.vmem [shape: f32[1,3,8,128], index: 2, kind: output, shape index: {}]  }
   0x1   :  { %v15_v0 = vld [vmem:[%s160_s0] sm:$0xff]  ;;  %v98_v1 = vld [vmem:[%s160_s0 + $0x8] sm:$0xff]  ;;  %v99_v2 = vld [vmem:[%s160_s0 + $0x10] sm:$0xff] }
   0x2   :  { %v100_v3 = vld [vmem:[%s160_s0 + $0x18] sm:$0xff]  ;;  %v25_v4 = vld [vmem:[%s161_s1] sm:$0xff]  ;;  %v101_v5 = vld [vmem:[%s161_s1 + $0x8] sm:$0xff]  ;;  %v35_v6 = vsub.f32 %v99_v2, %v15_v0  ;;  %v12_v35 = vshrl.u32 %v11_v31, 7  ;;  %v14_v36 = vand.u32 127, %v11_v31 }
   0x3   :  { %v102_v7 = vld [vmem:[%s161_s1 + $0x10] sm:$0xff]  ;;  %v103_v8 = vld [vmem:[%s161_s1 + $0x18] sm:$0xff]  ;;  %v36_v9 = vsub.f32 %v100_v3, %v98_v1  ;;  %v39_v10 = vmax.f32 %v15_v0, %v25_v4  ;;  %v43_v11 = vmax.f32 %v98_v1, %v101_v5  ;;  %v54_v12 = vmin.f32 %v15_v0, %v25_v4 }
   0x4   :  { %v32_v13 = vsub.f32 %v102_v7, %v25_v4  ;;  %v33_v14 = vsub.f32 %v103_v8, %v101_v5  ;;  %v38_v15 = vmin.f32 %v99_v2, %v102_v7  ;;  %v42_v16 = vmin.f32 %v100_v3, %v103_v8 }
   0x5   :  { %v37_v17 = vmul.f32 %v36_v9, %v35_v6  ;;  %v53_v18 = vmax.f32 %v99_v2, %v102_v7  ;;  %v56_v19 = vmax.f32 %v100_v3, %v103_v8  ;;  %v57_v23 = vmin.f32 %v98_v1, %v101_v5 }
   0x6   :  { %v34_v20 = vmul.f32 %v33_v14, %v32_v13  ;;  %v40_v21 = vsub.f32 %v38_v15, %v39_v10  ;;  %v44_v22 = vsub.f32 %v42_v16, %v43_v11  ;;  %v71_v37 = vmul.u32 128, %v12_v35 }
   0x7   :  { %v55_v24 = vsub.f32 %v53_v18, %v54_v12  ;;  %v58_v28 = vsub.f32 %v56_v19, %v57_v23 }
   0x8   :  { %v41_v25 = vmax.f32 %v40_v21, 0.0  ;;  %v45_v26 = vmax.f32 %v44_v22, 0.0  ;;  %v47_v27 = vadd.f32 %v37_v17, %v34_v20  ;;  %v72_v38 = vadd.s32 %v71_v37, %v14_v36 }
   0x9   :  { %v59_v30 = vmul.f32 %v58_v28, %v55_v24 }
   0xa   :  { %v46_v29 = vmul.f32 %v45_v26, %v41_v25  ;;  %vm73_vm0 = vcmp.lt.s32.totalorder %v72_v38, 8 }
   0xb   :  { %v60_v33 = vadd.f32 1e-07, %v59_v30 }
   0xc   :  { %v48_v32 = vsub.f32 %v47_v27, %v46_v29  ;;  %v49_v40 = vadd.f32 1.0, %v46_v29 }
   0xd   :  { %106 = vrcp.f32 %v60_v33 }
   0xe   :  { %v50_v34 = vadd.f32 1.0, %v48_v32  ;;  %v61_v39 = vsub.f32 %v60_v33, %v48_v32 }
  0x10   :  { %108 = vrcp.f32 %v50_v34 }
  0x1a   :  { %v107_v41 = vpop.eup %106 }
  0x1b   :  { %v63_v42 = vmul.f32 %v107_v41, %v61_v39 }
  0x1d   :  { %v109_v43 = vpop.eup %108  ;;  %v76_v45 = vsel %vm73_vm0, %v63_v42, 0.0 }
  0x1e   :  { %v52_v44 = vmul.f32 %v109_v43, %v49_v40  ;;  %105 = vst [vmem:[%s162_s2 + $0x10] sm:$0xff] %v76_v45 }
  0x20   :  { %110 = vlog2.f32 %v52_v44  ;;  %v75_v46 = vsel %vm73_vm0, %v52_v44, 0.0 }
  0x21   :  { %104 = vst [vmem:[%s162_s2 + $0x8] sm:$0xff] %v75_v46 }
  0x2d   :  { %v111_v47 = vpop.eup %110 }
  0x2e   :  { %v65_v48 = vmul.f32 0.6931472, %v111_v47 }
  0x30   :  { %v66_v49 = vsub.f32 0.0, %v65_v48 }
  0x32   :  { %v74_v50 = vsel %vm73_vm0, %v66_v49, 0.0 }
  0x33   :  { %83 = vst [vmem:[%s162_s2] sm:$0xff] %v74_v50 }

</bundles_post_ra>
